<compile_context>
chip_gen: v6e
topology: v6e:2x2x1
jax: 0.10.0
libtpu: 0.0.40
codegen_flags: <defaults>
</compile_context>

<pallas_src>
import functools

import jax
import jax.numpy as jnp
from jax.experimental import pallas as pl
from jax.experimental.pallas import tpu as pltpu


def _make_tcn_kernel(layer_meta, bt, T, pad_max, c_max, skip_conn):
    """Fused TemporalConv forward for one batch tile (all layers, one call).

    layer_meta: tuple of (c_in, c_out, K, dilation) per layer (static).
    Ref order: x, (w0, b0, w1, b1, ...), out, xpad_scratch.
      x_ref:    (bt, c_in0, T)  f32        input batch tile
      w_ref:    (c_out, K*c_in) bf16       tap-major concatenated weights
      b_ref:    (c_out, 1)      f32        bias
      o_ref:    (c_last, bt*T)             lane-dense output slab
      xpad_ref: (bt, c_max, T + 2*pad_max) bf16  zero-haloed activations
    """
    num_layers = len(layer_meta)
    c_in0 = layer_meta[0][0]

    def kernel(*refs):
        x_ref = refs[0]
        wb = refs[1:1 + 2 * num_layers]
        o_ref = refs[1 + 2 * num_layers]
        xpad_ref = refs[2 + 2 * num_layers]

        # Zero ONLY the halo columns; the interior columns are overwritten by
        # the activation staging of every layer ("same" padding in VMEM).
        if pad_max > 0:
            halo = jnp.zeros((c_max, pad_max), jnp.bfloat16)
            for b in range(bt):
                xpad_ref[b, :, :pad_max] = halo
                xpad_ref[b, :, pad_max + T:] = halo

        # Stage the layer-0 input (single bf16 cast; MXU operands are bf16).
        for b in range(bt):
            xpad_ref[b, :c_in0, pad_max:pad_max + T] = (
                x_ref[b].astype(jnp.bfloat16))

        out = None
        s = None
        for l, (c_in, c_out, K, d) in enumerate(layer_meta):
            w_ref = wb[2 * l]        # (c_out, K*c_in) bf16, tap-major concat
            b_ref = wb[2 * l + 1]    # (c_out, 1) f32
            pad = (K - 1) * d // 2

            # Build each shifted tap in registers (read from the haloed VMEM
            # buffer, lane-concatenate the batch) and accumulate one bf16 MXU
            # matmul per tap into an f32 accumulator.  No slab scratch, no
            # VMEM store + reload round trip.
            out = None
            for k in range(K):
                start = pad_max - pad + k * d                       # static
                cols = [xpad_ref[b, :c_in, start:start + T] for b in range(bt)]
                tap = cols[0] if bt == 1 else jnp.concatenate(cols, axis=1)
                w_k = w_ref[:, k * c_in:(k + 1) * c_in]             # (c_out, c_in)
                part = jnp.dot(w_k, tap,
                               preferred_element_type=jnp.float32)  # (c_out, bt*T)
                out = part if out is None else out + part

            out = jnp.maximum(out + b_ref[...], 0.0)                # bias + ReLU

            if skip_conn:
                if l == 0:
                    s = out
                elif (l - 1) % 2 == 1:   # matches `if i % 2:` over layers[1:]
                    out = out + s
                    s = out

            if l < num_layers - 1:
                # Stage activation for the next layer (halo columns stay 0).
                act = out.astype(jnp.bfloat16)
                for b in range(bt):
                    xpad_ref[b, :c_out, pad_max:pad_max + T] = (
                        act[:, b * T:(b + 1) * T])

        # Lane-dense writeback: one (c_last, bt*T) store.  The PyTorch NCW
        # layout is restored by a single cheap reshape/transpose in the wrapper.
        o_ref[...] = out.astype(o_ref.dtype)

    return kernel


def _pick_batch_tile(B, T):
    """Pick a batch tile bt (divisor of B) for the lane-dense matmul layout.

    Requires either bt == B (single output block spanning the lane axis) or
    bt*T a multiple of 128 (lane-aligned output blocks).  Prefers the smallest
    tile reaching >= 128 lanes so that multiple grid steps exist for the
    "parallel" axis (dual TensorCores on v7x) while filling the MXU lanes.
    """
    cands = [d for d in range(1, B + 1)
             if B % d == 0 and (d == B or (d * T) % 128 == 0)]
    for d in cands:
        if 128 <= d * T <= 4096:
            return d
    return cands[-1]   # bt == B is always a candidate


def temporal_conv_net_forward(x, prepared_params, *, vital_signs, seq_length,
                              kernel_size, skip_conn=True):
    """Forward pass of TemporalConvNet (single_tcn=True, mid_dense=False).

    x: any shape that reshapes to (-1, vital_signs, seq_length).
    prepared_params: list of (w_cat_bf16, bias_f32) from prepare_params().
    Returns (B, num_channels[-1], seq_length).
    """
    x = x.reshape(-1, vital_signs, seq_length)
    B, _, T = x.shape

    layer_meta = []
    c_in = vital_signs
    for i, (w_cat, _) in enumerate(prepared_params):
        c_out = w_cat.shape[0]
        layer_meta.append((c_in, c_out, kernel_size, 2 ** i))
        c_in = c_out
    layer_meta = tuple(layer_meta)

    pad_max = max((K - 1) * d // 2 for (_, _, K, d) in layer_meta)
    c_max = max(max(ci for ci, _, _, _ in layer_meta),
                max(co for _, co, _, _ in layer_meta))
    T_pad = T + 2 * pad_max
    c_last = layer_meta[-1][1]

    bt = _pick_batch_tile(B, T)
    nbt = B // bt

    kernel = _make_tcn_kernel(layer_meta, bt, T, pad_max, c_max, skip_conn)

    in_specs = [pl.BlockSpec((bt, vital_signs, T), lambda i: (i, 0, 0))]
    args = [x]
    for (c_in_l, c_out_l, K, _), (w_cat, b2) in zip(layer_meta, prepared_params):
        # Constant index_map -> weights stay resident across the batch grid.
        in_specs.append(pl.BlockSpec((c_out_l, K * c_in_l), lambda i: (0, 0)))
        in_specs.append(pl.BlockSpec((c_out_l, 1), lambda i: (0, 0)))
        args += [w_cat, b2]

    # Explicit VMEM budget (double-buffered blocks + scratch) with headroom so
    # production-sized tilings are checked against v7x's smaller VMEM.
    bytes_blocks = (bt * vital_signs * T * 4
                    + sum(co * K * ci * 2 + co * 4
                          for ci, co, K, _ in layer_meta)
                    + c_last * bt * T * 4)
    bytes_scratch = bt * c_max * T_pad * 2
    vmem_limit = int(min(120 * 2 ** 20,
                         max(16 * 2 ** 20,
                             8 * (2 * bytes_blocks + bytes_scratch))))

    out2d = pl.pallas_call(
        kernel,
        out_shape=jax.ShapeDtypeStruct((c_last, B * T), x.dtype),
        grid=(nbt,),
        in_specs=in_specs,
        out_specs=pl.BlockSpec((c_last, bt * T), lambda i: (0, i)),
        scratch_shapes=[
            pltpu.VMEM((bt, c_max, T_pad), jnp.bfloat16),   # zero-haloed acts
        ],
        compiler_params=pltpu.CompilerParams(
            dimension_semantics=("parallel",),
            vmem_limit_bytes=vmem_limit),
    )(*args)

    # Un-flatten the lane-dense (c_last, B*T) slab to PyTorch NCW (B, C, T).
    return out2d.reshape(c_last, B, T).transpose(1, 0, 2)


def init_params(key, vital_signs, num_channels, kernel_size):
    """Deterministic synthetic parameters (PyTorch Conv1d weight/bias shapes)."""
    params = []
    in_ch = vital_signs
    for out_ch in num_channels:
        key, kw, kb = jax.random.split(key, 3)
        scale = 1.0 / jnp.sqrt(in_ch * kernel_size)
        w = jax.random.uniform(kw, (out_ch, in_ch, kernel_size),
                               jnp.float32, -scale, scale)
        b = jax.random.uniform(kb, (out_ch,), jnp.float32, -scale, scale)
        params.append({"w": w, "b": b})
        in_ch = out_ch
    return params


def prepare_params(params):
    """One-time weight re-layout (done at init, NOT per forward call).

    PyTorch (C_out, C_in, K) -> (C_out, K*C_in) tap-major concat, cast to bf16
    (MXU-native operand); bias -> (C_out, 1) kept in f32 for the f32 epilogue.
    """
    prepared = []
    for p in params:
        w, b = p["w"], p["b"]
        c_out, c_in, K = w.shape
        w_cat = jnp.concatenate([w[:, :, k] for k in range(K)],
                                axis=1).astype(jnp.bfloat16)
        prepared.append((w_cat, b.reshape(c_out, 1).astype(jnp.float32)))
    return prepared


def _reference_forward(x, params, *, vital_signs, seq_length, skip_conn=True):
    """Pure-JAX f32 reference (lax conv) mirroring the PyTorch semantics."""
    def conv_relu(x, w, b, dilation):
        K = w.shape[-1]
        pad = (K - 1) * dilation // 2
        y = jax.lax.conv_general_dilated(
            x, w, window_strides=(1,), padding=[(pad, pad)],
            rhs_dilation=(dilation,),
            dimension_numbers=("NCW", "OIW", "NCW"))
        return jnp.maximum(y + b[None, :, None], 0.0)

    x = x.reshape(-1, vital_signs, seq_length)
    o = conv_relu(x, params[0]["w"], params[0]["b"], 1)
    s = o
    for i, p in enumerate(params[1:]):
        o = conv_relu(o, p["w"], p["b"], 2 ** (i + 1))
        if skip_conn and (i % 2):
            o = o + s
            s = o
    return o


if __name__ == "__main__":
    # Module config: data_minutes=16, vital_signs=4, num_channels=[32,32,32],
    # kernel_size=3, skip_conn=True, batch_norm=False, mid_dense=False,
    # single_tcn=True.
    data_minutes = 16
    vital_signs = 4
    num_channels = [32, 32, 32]
    kernel_size = 3
    batch = 2

    key = jax.random.PRNGKey(0)
    kx, kp = jax.random.split(key)
    x = jax.random.normal(kx, (batch, vital_signs, data_minutes), jnp.float32)
    params = init_params(kp, vital_signs, num_channels, kernel_size)
    prepared = prepare_params(params)   # one-time bf16 weight re-layout

    fwd = jax.jit(functools.partial(temporal_conv_net_forward,
                                    vital_signs=vital_signs,
                                    seq_length=data_minutes,
                                    kernel_size=kernel_size,
                                    skip_conn=True))
    out = jax.block_until_ready(fwd(x, prepared))

    ref = _reference_forward(x, params, vital_signs=vital_signs,
                             seq_length=data_minutes, skip_conn=True)
    assert out.shape == (batch, num_channels[-1], data_minutes)
    # bf16 MXU operands with f32 accumulation -> relaxed tolerance vs f32 ref.
    assert jnp.allclose(out, ref, atol=5e-2, rtol=5e-2), (
        float(jnp.max(jnp.abs(out - ref))))
    print("KERNEL_OK")
</pallas_src>

<mosaic_0001>
module attributes {stable_mosaic.version = 11 : i64} {
  func.func @kernel(%arg0: i32, %arg1: memref<2x4x16xf32, #tpu.memory_space<vmem>>, %arg2: memref<32x12xbf16, #tpu.memory_space<vmem>>, %arg3: memref<32x1xf32, #tpu.memory_space<vmem>>, %arg4: memref<32x96xbf16, #tpu.memory_space<vmem>>, %arg5: memref<32x1xf32, #tpu.memory_space<vmem>>, %arg6: memref<32x96xbf16, #tpu.memory_space<vmem>>, %arg7: memref<32x1xf32, #tpu.memory_space<vmem>>, %arg8: memref<32x32xf32, #tpu.memory_space<vmem>>, %arg9: memref<2x32x24xbf16, #tpu.memory_space<vmem>>) attributes {dimension_semantics = [#tpu.dimension_semantics<parallel>], iteration_bounds = array<i64: 1>, scalar_prefetch = 0 : i64, scratch_operands = 1 : i64, tpu.core_type = #tpu.core_type<tc>, window_params = [{transform_indices = @transform_0, window_bounds = array<i64: 2, 4, 16>}, {pipeline_mode = #tpu.pipeline_mode<synchronous>, transform_indices = @transform_1, window_bounds = array<i64: 32, 12>}, {pipeline_mode = #tpu.pipeline_mode<synchronous>, transform_indices = @transform_2, window_bounds = array<i64: 32, 1>}, {pipeline_mode = #tpu.pipeline_mode<synchronous>, transform_indices = @transform_3, window_bounds = array<i64: 32, 96>}, {pipeline_mode = #tpu.pipeline_mode<synchronous>, transform_indices = @transform_4, window_bounds = array<i64: 32, 1>}, {pipeline_mode = #tpu.pipeline_mode<synchronous>, transform_indices = @transform_5, window_bounds = array<i64: 32, 96>}, {pipeline_mode = #tpu.pipeline_mode<synchronous>, transform_indices = @transform_6, window_bounds = array<i64: 32, 1>}, {transform_indices = @transform_7, window_bounds = array<i64: 32, 32>}]} {
    %cst = arith.constant 0.000000e+00 : bf16
    %0 = vector.broadcast %cst : bf16 to vector<32x4xbf16>
    %c0 = arith.constant 0 : index
    %c0_0 = arith.constant 0 : index
    %c0_1 = arith.constant 0 : index
    %1 = vector.load %arg9[%c0, %c0_0, %c0_1] : memref<2x32x24xbf16, #tpu.memory_space<vmem>>, vector<1x32x4xbf16>
    %2 = vector.shape_cast %1 : vector<1x32x4xbf16> to vector<32x4xbf16>
    %3 = vector.shape_cast %0 : vector<32x4xbf16> to vector<1x32x4xbf16>
    tpu.vector_store %arg9[%c0, %c0_0, %c0_1], %3 {strides = array<i32>} : memref<2x32x24xbf16, #tpu.memory_space<vmem>>, vector<1x32x4xbf16>,
    %c0_2 = arith.constant 0 : index
    %c0_3 = arith.constant 0 : index
    %c20 = arith.constant 20 : index
    %4 = vector.load %arg9[%c0_2, %c0_3, %c20] : memref<2x32x24xbf16, #tpu.memory_space<vmem>>, vector<1x32x4xbf16>
    %5 = vector.shape_cast %4 : vector<1x32x4xbf16> to vector<32x4xbf16>
    %6 = vector.shape_cast %0 : vector<32x4xbf16> to vector<1x32x4xbf16>
    tpu.vector_store %arg9[%c0_2, %c0_3, %c20], %6 {strides = array<i32>} : memref<2x32x24xbf16, #tpu.memory_space<vmem>>, vector<1x32x4xbf16>,
    %c1 = arith.constant 1 : index
    %c0_4 = arith.constant 0 : index
    %c0_5 = arith.constant 0 : index
    %7 = vector.load %arg9[%c1, %c0_4, %c0_5] : memref<2x32x24xbf16, #tpu.memory_space<vmem>>, vector<1x32x4xbf16>
    %8 = vector.shape_cast %7 : vector<1x32x4xbf16> to vector<32x4xbf16>
    %9 = vector.shape_cast %0 : vector<32x4xbf16> to vector<1x32x4xbf16>
    tpu.vector_store %arg9[%c1, %c0_4, %c0_5], %9 {strides = array<i32>} : memref<2x32x24xbf16, #tpu.memory_space<vmem>>, vector<1x32x4xbf16>,
    %c1_6 = arith.constant 1 : index
    %c0_7 = arith.constant 0 : index
    %c20_8 = arith.constant 20 : index
    %10 = vector.load %arg9[%c1_6, %c0_7, %c20_8] : memref<2x32x24xbf16, #tpu.memory_space<vmem>>, vector<1x32x4xbf16>
    %11 = vector.shape_cast %10 : vector<1x32x4xbf16> to vector<32x4xbf16>
    %12 = vector.shape_cast %0 : vector<32x4xbf16> to vector<1x32x4xbf16>
    tpu.vector_store %arg9[%c1_6, %c0_7, %c20_8], %12 {strides = array<i32>} : memref<2x32x24xbf16, #tpu.memory_space<vmem>>, vector<1x32x4xbf16>,
    %c0_9 = arith.constant 0 : index
    %c0_10 = arith.constant 0 : index
    %c0_11 = arith.constant 0 : index
    %13 = vector.load %arg1[%c0_9, %c0_10, %c0_11] : memref<2x4x16xf32, #tpu.memory_space<vmem>>, vector<1x4x16xf32>
    %14 = vector.shape_cast %13 : vector<1x4x16xf32> to vector<4x16xf32>
    %15 = arith.truncf %14 : vector<4x16xf32> to vector<4x16xbf16>
    %c0_12 = arith.constant 0 : index
    %c0_13 = arith.constant 0 : index
    %c4 = arith.constant 4 : index
    %16 = vector.load %arg9[%c0_12, %c0_13, %c4] : memref<2x32x24xbf16, #tpu.memory_space<vmem>>, vector<1x4x16xbf16>
    %17 = vector.shape_cast %16 : vector<1x4x16xbf16> to vector<4x16xbf16>
    %18 = vector.shape_cast %15 : vector<4x16xbf16> to vector<1x4x16xbf16>
    tpu.vector_store %arg9[%c0_12, %c0_13, %c4], %18 {strides = array<i32>} : memref<2x32x24xbf16, #tpu.memory_space<vmem>>, vector<1x4x16xbf16>,
    %c1_14 = arith.constant 1 : index
    %c0_15 = arith.constant 0 : index
    %c0_16 = arith.constant 0 : index
    %19 = vector.load %arg1[%c1_14, %c0_15, %c0_16] : memref<2x4x16xf32, #tpu.memory_space<vmem>>, vector<1x4x16xf32>
    %20 = vector.shape_cast %19 : vector<1x4x16xf32> to vector<4x16xf32>
    %21 = arith.truncf %20 : vector<4x16xf32> to vector<4x16xbf16>
    %c1_17 = arith.constant 1 : index
    %c0_18 = arith.constant 0 : index
    %c4_19 = arith.constant 4 : index
    %22 = vector.load %arg9[%c1_17, %c0_18, %c4_19] : memref<2x32x24xbf16, #tpu.memory_space<vmem>>, vector<1x4x16xbf16>
    %23 = vector.shape_cast %22 : vector<1x4x16xbf16> to vector<4x16xbf16>
    %24 = vector.shape_cast %21 : vector<4x16xbf16> to vector<1x4x16xbf16>
    tpu.vector_store %arg9[%c1_17, %c0_18, %c4_19], %24 {strides = array<i32>} : memref<2x32x24xbf16, #tpu.memory_space<vmem>>, vector<1x4x16xbf16>,
    %c0_20 = arith.constant 0 : index
    %c0_21 = arith.constant 0 : index
    %c3 = arith.constant 3 : index
    %25 = vector.load %arg9[%c0_20, %c0_21, %c3] : memref<2x32x24xbf16, #tpu.memory_space<vmem>>, vector<1x4x16xbf16>
    %26 = vector.shape_cast %25 : vector<1x4x16xbf16> to vector<4x16xbf16>
    %c1_22 = arith.constant 1 : index
    %c0_23 = arith.constant 0 : index
    %c3_24 = arith.constant 3 : index
    %27 = vector.load %arg9[%c1_22, %c0_23, %c3_24] : memref<2x32x24xbf16, #tpu.memory_space<vmem>>, vector<1x4x16xbf16>
    %28 = vector.shape_cast %27 : vector<1x4x16xbf16> to vector<4x16xbf16>
    %29 = tpu.concatenate %26, %28 in 1 : vector<4x16xbf16>, vector<4x16xbf16> -> vector<4x32xbf16>
    %c0_25 = arith.constant 0 : index
    %c0_26 = arith.constant 0 : index
    %30 = vector.load %arg2[%c0_25, %c0_26] : memref<32x12xbf16, #tpu.memory_space<vmem>>, vector<32x4xbf16>
    %cst_27 = arith.constant dense<0.000000e+00> : vector<32x32xf32>
    %31 = tpu.matmul %30, %29, %cst_27 {dimension_numbers = #tpu.dot_dimension_numbers<[1], [0], [0], [1], [0, 0, 1, 1], [], []>} : vector<32x4xbf16>, vector<4x32xbf16>, vector<32x32xf32> -> vector<32x32xf32>
    %c0_28 = arith.constant 0 : index
    %c0_29 = arith.constant 0 : index
    %c4_30 = arith.constant 4 : index
    %32 = vector.load %arg9[%c0_28, %c0_29, %c4_30] : memref<2x32x24xbf16, #tpu.memory_space<vmem>>, vector<1x4x16xbf16>
    %33 = vector.shape_cast %32 : vector<1x4x16xbf16> to vector<4x16xbf16>
    %c1_31 = arith.constant 1 : index
    %c0_32 = arith.constant 0 : index
    %c4_33 = arith.constant 4 : index
    %34 = vector.load %arg9[%c1_31, %c0_32, %c4_33] : memref<2x32x24xbf16, #tpu.memory_space<vmem>>, vector<1x4x16xbf16>
    %35 = vector.shape_cast %34 : vector<1x4x16xbf16> to vector<4x16xbf16>
    %36 = tpu.concatenate %33, %35 in 1 : vector<4x16xbf16>, vector<4x16xbf16> -> vector<4x32xbf16>
    %c0_34 = arith.constant 0 : index
    %c4_35 = arith.constant 4 : index
    %37 = vector.load %arg2[%c0_34, %c4_35] : memref<32x12xbf16, #tpu.memory_space<vmem>>, vector<32x4xbf16>
    %cst_36 = arith.constant dense<0.000000e+00> : vector<32x32xf32>
    %38 = tpu.matmul %37, %36, %cst_36 {dimension_numbers = #tpu.dot_dimension_numbers<[1], [0], [0], [1], [0, 0, 1, 1], [], []>} : vector<32x4xbf16>, vector<4x32xbf16>, vector<32x32xf32> -> vector<32x32xf32>
    %39 = arith.addf %31, %38 : vector<32x32xf32>
    %c0_37 = arith.constant 0 : index
    %c0_38 = arith.constant 0 : index
    %c5 = arith.constant 5 : index
    %40 = vector.load %arg9[%c0_37, %c0_38, %c5] : memref<2x32x24xbf16, #tpu.memory_space<vmem>>, vector<1x4x16xbf16>
    %41 = vector.shape_cast %40 : vector<1x4x16xbf16> to vector<4x16xbf16>
    %c1_39 = arith.constant 1 : index
    %c0_40 = arith.constant 0 : index
    %c5_41 = arith.constant 5 : index
    %42 = vector.load %arg9[%c1_39, %c0_40, %c5_41] : memref<2x32x24xbf16, #tpu.memory_space<vmem>>, vector<1x4x16xbf16>
    %43 = vector.shape_cast %42 : vector<1x4x16xbf16> to vector<4x16xbf16>
    %44 = tpu.concatenate %41, %43 in 1 : vector<4x16xbf16>, vector<4x16xbf16> -> vector<4x32xbf16>
    %c0_42 = arith.constant 0 : index
    %c8 = arith.constant 8 : index
    %45 = vector.load %arg2[%c0_42, %c8] : memref<32x12xbf16, #tpu.memory_space<vmem>>, vector<32x4xbf16>
    %cst_43 = arith.constant dense<0.000000e+00> : vector<32x32xf32>
    %46 = tpu.matmul %45, %44, %cst_43 {dimension_numbers = #tpu.dot_dimension_numbers<[1], [0], [0], [1], [0, 0, 1, 1], [], []>} : vector<32x4xbf16>, vector<4x32xbf16>, vector<32x32xf32> -> vector<32x32xf32>
    %47 = arith.addf %39, %46 : vector<32x32xf32>
    %c0_44 = arith.constant 0 : index
    %c0_45 = arith.constant 0 : index
    %48 = vector.load %arg3[%c0_44, %c0_45] : memref<32x1xf32, #tpu.memory_space<vmem>>, vector<32x1xf32>
    %49 = vector.broadcast %48 : vector<32x1xf32> to vector<32x32xf32>
    %50 = arith.addf %47, %49 : vector<32x32xf32>
    %cst_46 = arith.constant 0.000000e+00 : f32
    %51 = vector.broadcast %cst_46 : f32 to vector<32x32xf32>
    %52 = arith.maximumf %50, %51 : vector<32x32xf32>
    %53 = arith.truncf %52 : vector<32x32xf32> to vector<32x32xbf16>
    %54 = vector.extract_strided_slice %53 {offsets = [0, 0], sizes = [32, 16], strides = [1, 1]} : vector<32x32xbf16> to vector<32x16xbf16>
    %c0_47 = arith.constant 0 : index
    %c0_48 = arith.constant 0 : index
    %c4_49 = arith.constant 4 : index
    %55 = vector.load %arg9[%c0_47, %c0_48, %c4_49] : memref<2x32x24xbf16, #tpu.memory_space<vmem>>, vector<1x32x16xbf16>
    %56 = vector.shape_cast %55 : vector<1x32x16xbf16> to vector<32x16xbf16>
    %57 = vector.shape_cast %54 : vector<32x16xbf16> to vector<1x32x16xbf16>
    tpu.vector_store %arg9[%c0_47, %c0_48, %c4_49], %57 {strides = array<i32>} : memref<2x32x24xbf16, #tpu.memory_space<vmem>>, vector<1x32x16xbf16>,
    %58 = vector.extract_strided_slice %53 {offsets = [0, 16], sizes = [32, 16], strides = [1, 1]} : vector<32x32xbf16> to vector<32x16xbf16>
    %c1_50 = arith.constant 1 : index
    %c0_51 = arith.constant 0 : index
    %c4_52 = arith.constant 4 : index
    %59 = vector.load %arg9[%c1_50, %c0_51, %c4_52] : memref<2x32x24xbf16, #tpu.memory_space<vmem>>, vector<1x32x16xbf16>
    %60 = vector.shape_cast %59 : vector<1x32x16xbf16> to vector<32x16xbf16>
    %61 = vector.shape_cast %58 : vector<32x16xbf16> to vector<1x32x16xbf16>
    tpu.vector_store %arg9[%c1_50, %c0_51, %c4_52], %61 {strides = array<i32>} : memref<2x32x24xbf16, #tpu.memory_space<vmem>>, vector<1x32x16xbf16>,
    %c0_53 = arith.constant 0 : index
    %c0_54 = arith.constant 0 : index
    %c2 = arith.constant 2 : index
    %62 = vector.load %arg9[%c0_53, %c0_54, %c2] : memref<2x32x24xbf16, #tpu.memory_space<vmem>>, vector<1x32x16xbf16>
    %63 = vector.shape_cast %62 : vector<1x32x16xbf16> to vector<32x16xbf16>
    %c1_55 = arith.constant 1 : index
    %c0_56 = arith.constant 0 : index
    %c2_57 = arith.constant 2 : index
    %64 = vector.load %arg9[%c1_55, %c0_56, %c2_57] : memref<2x32x24xbf16, #tpu.memory_space<vmem>>, vector<1x32x16xbf16>
    %65 = vector.shape_cast %64 : vector<1x32x16xbf16> to vector<32x16xbf16>
    %66 = tpu.concatenate %63, %65 in 1 : vector<32x16xbf16>, vector<32x16xbf16> -> vector<32x32xbf16>
    %c0_58 = arith.constant 0 : index
    %c0_59 = arith.constant 0 : index
    %67 = vector.load %arg4[%c0_58, %c0_59] : memref<32x96xbf16, #tpu.memory_space<vmem>>, vector<32x32xbf16>
    %cst_60 = arith.constant dense<0.000000e+00> : vector<32x32xf32>
    %68 = tpu.matmul %67, %66, %cst_60 {dimension_numbers = #tpu.dot_dimension_numbers<[1], [0], [0], [1], [0, 0, 1, 1], [], []>} : vector<32x32xbf16>, vector<32x32xbf16>, vector<32x32xf32> -> vector<32x32xf32>
    %c0_61 = arith.constant 0 : index
    %c0_62 = arith.constant 0 : index
    %c4_63 = arith.constant 4 : index
    %69 = vector.load %arg9[%c0_61, %c0_62, %c4_63] : memref<2x32x24xbf16, #tpu.memory_space<vmem>>, vector<1x32x16xbf16>
    %70 = vector.shape_cast %69 : vector<1x32x16xbf16> to vector<32x16xbf16>
    %c1_64 = arith.constant 1 : index
    %c0_65 = arith.constant 0 : index
    %c4_66 = arith.constant 4 : index
    %71 = vector.load %arg9[%c1_64, %c0_65, %c4_66] : memref<2x32x24xbf16, #tpu.memory_space<vmem>>, vector<1x32x16xbf16>
    %72 = vector.shape_cast %71 : vector<1x32x16xbf16> to vector<32x16xbf16>
    %73 = tpu.concatenate %70, %72 in 1 : vector<32x16xbf16>, vector<32x16xbf16> -> vector<32x32xbf16>
    %c0_67 = arith.constant 0 : index
    %c32 = arith.constant 32 : index
    %74 = vector.load %arg4[%c0_67, %c32] : memref<32x96xbf16, #tpu.memory_space<vmem>>, vector<32x32xbf16>
    %cst_68 = arith.constant dense<0.000000e+00> : vector<32x32xf32>
    %75 = tpu.matmul %74, %73, %cst_68 {dimension_numbers = #tpu.dot_dimension_numbers<[1], [0], [0], [1], [0, 0, 1, 1], [], []>} : vector<32x32xbf16>, vector<32x32xbf16>, vector<32x32xf32> -> vector<32x32xf32>
    %76 = arith.addf %68, %75 : vector<32x32xf32>
    %c0_69 = arith.constant 0 : index
    %c0_70 = arith.constant 0 : index
    %c6 = arith.constant 6 : index
    %77 = vector.load %arg9[%c0_69, %c0_70, %c6] : memref<2x32x24xbf16, #tpu.memory_space<vmem>>, vector<1x32x16xbf16>
    %78 = vector.shape_cast %77 : vector<1x32x16xbf16> to vector<32x16xbf16>
    %c1_71 = arith.constant 1 : index
    %c0_72 = arith.constant 0 : index
    %c6_73 = arith.constant 6 : index
    %79 = vector.load %arg9[%c1_71, %c0_72, %c6_73] : memref<2x32x24xbf16, #tpu.memory_space<vmem>>, vector<1x32x16xbf16>
    %80 = vector.shape_cast %79 : vector<1x32x16xbf16> to vector<32x16xbf16>
    %81 = tpu.concatenate %78, %80 in 1 : vector<32x16xbf16>, vector<32x16xbf16> -> vector<32x32xbf16>
    %c0_74 = arith.constant 0 : index
    %c64 = arith.constant 64 : index
    %82 = vector.load %arg4[%c0_74, %c64] : memref<32x96xbf16, #tpu.memory_space<vmem>>, vector<32x32xbf16>
    %cst_75 = arith.constant dense<0.000000e+00> : vector<32x32xf32>
    %83 = tpu.matmul %82, %81, %cst_75 {dimension_numbers = #tpu.dot_dimension_numbers<[1], [0], [0], [1], [0, 0, 1, 1], [], []>} : vector<32x32xbf16>, vector<32x32xbf16>, vector<32x32xf32> -> vector<32x32xf32>
    %84 = arith.addf %76, %83 : vector<32x32xf32>
    %c0_76 = arith.constant 0 : index
    %c0_77 = arith.constant 0 : index
    %85 = vector.load %arg5[%c0_76, %c0_77] : memref<32x1xf32, #tpu.memory_space<vmem>>, vector<32x1xf32>
    %86 = vector.broadcast %85 : vector<32x1xf32> to vector<32x32xf32>
    %87 = arith.addf %84, %86 : vector<32x32xf32>
    %cst_78 = arith.constant 0.000000e+00 : f32
    %88 = vector.broadcast %cst_78 : f32 to vector<32x32xf32>
    %89 = arith.maximumf %87, %88 : vector<32x32xf32>
    %90 = arith.truncf %89 : vector<32x32xf32> to vector<32x32xbf16>
    %91 = vector.extract_strided_slice %90 {offsets = [0, 0], sizes = [32, 16], strides = [1, 1]} : vector<32x32xbf16> to vector<32x16xbf16>
    %c0_79 = arith.constant 0 : index
    %c0_80 = arith.constant 0 : index
    %c4_81 = arith.constant 4 : index
    %92 = vector.load %arg9[%c0_79, %c0_80, %c4_81] : memref<2x32x24xbf16, #tpu.memory_space<vmem>>, vector<1x32x16xbf16>
    %93 = vector.shape_cast %92 : vector<1x32x16xbf16> to vector<32x16xbf16>
    %94 = vector.shape_cast %91 : vector<32x16xbf16> to vector<1x32x16xbf16>
    tpu.vector_store %arg9[%c0_79, %c0_80, %c4_81], %94 {strides = array<i32>} : memref<2x32x24xbf16, #tpu.memory_space<vmem>>, vector<1x32x16xbf16>,
    %95 = vector.extract_strided_slice %90 {offsets = [0, 16], sizes = [32, 16], strides = [1, 1]} : vector<32x32xbf16> to vector<32x16xbf16>
    %c1_82 = arith.constant 1 : index
    %c0_83 = arith.constant 0 : index
    %c4_84 = arith.constant 4 : index
    %96 = vector.load %arg9[%c1_82, %c0_83, %c4_84] : memref<2x32x24xbf16, #tpu.memory_space<vmem>>, vector<1x32x16xbf16>
    %97 = vector.shape_cast %96 : vector<1x32x16xbf16> to vector<32x16xbf16>
    %98 = vector.shape_cast %95 : vector<32x16xbf16> to vector<1x32x16xbf16>
    tpu.vector_store %arg9[%c1_82, %c0_83, %c4_84], %98 {strides = array<i32>} : memref<2x32x24xbf16, #tpu.memory_space<vmem>>, vector<1x32x16xbf16>,
    %c0_85 = arith.constant 0 : index
    %c0_86 = arith.constant 0 : index
    %c0_87 = arith.constant 0 : index
    %99 = vector.load %arg9[%c0_85, %c0_86, %c0_87] : memref<2x32x24xbf16, #tpu.memory_space<vmem>>, vector<1x32x16xbf16>
    %100 = vector.shape_cast %99 : vector<1x32x16xbf16> to vector<32x16xbf16>
    %c1_88 = arith.constant 1 : index
    %c0_89 = arith.constant 0 : index
    %c0_90 = arith.constant 0 : index
    %101 = vector.load %arg9[%c1_88, %c0_89, %c0_90] : memref<2x32x24xbf16, #tpu.memory_space<vmem>>, vector<1x32x16xbf16>
    %102 = vector.shape_cast %101 : vector<1x32x16xbf16> to vector<32x16xbf16>
    %103 = tpu.concatenate %100, %102 in 1 : vector<32x16xbf16>, vector<32x16xbf16> -> vector<32x32xbf16>
    %c0_91 = arith.constant 0 : index
    %c0_92 = arith.constant 0 : index
    %104 = vector.load %arg6[%c0_91, %c0_92] : memref<32x96xbf16, #tpu.memory_space<vmem>>, vector<32x32xbf16>
    %cst_93 = arith.constant dense<0.000000e+00> : vector<32x32xf32>
    %105 = tpu.matmul %104, %103, %cst_93 {dimension_numbers = #tpu.dot_dimension_numbers<[1], [0], [0], [1], [0, 0, 1, 1], [], []>} : vector<32x32xbf16>, vector<32x32xbf16>, vector<32x32xf32> -> vector<32x32xf32>
    %c0_94 = arith.constant 0 : index
    %c0_95 = arith.constant 0 : index
    %c4_96 = arith.constant 4 : index
    %106 = vector.load %arg9[%c0_94, %c0_95, %c4_96] : memref<2x32x24xbf16, #tpu.memory_space<vmem>>, vector<1x32x16xbf16>
    %107 = vector.shape_cast %106 : vector<1x32x16xbf16> to vector<32x16xbf16>
    %c1_97 = arith.constant 1 : index
    %c0_98 = arith.constant 0 : index
    %c4_99 = arith.constant 4 : index
    %108 = vector.load %arg9[%c1_97, %c0_98, %c4_99] : memref<2x32x24xbf16, #tpu.memory_space<vmem>>, vector<1x32x16xbf16>
    %109 = vector.shape_cast %108 : vector<1x32x16xbf16> to vector<32x16xbf16>
    %110 = tpu.concatenate %107, %109 in 1 : vector<32x16xbf16>, vector<32x16xbf16> -> vector<32x32xbf16>
    %c0_100 = arith.constant 0 : index
    %c32_101 = arith.constant 32 : index
    %111 = vector.load %arg6[%c0_100, %c32_101] : memref<32x96xbf16, #tpu.memory_space<vmem>>, vector<32x32xbf16>
    %cst_102 = arith.constant dense<0.000000e+00> : vector<32x32xf32>
    %112 = tpu.matmul %111, %110, %cst_102 {dimension_numbers = #tpu.dot_dimension_numbers<[1], [0], [0], [1], [0, 0, 1, 1], [], []>} : vector<32x32xbf16>, vector<32x32xbf16>, vector<32x32xf32> -> vector<32x32xf32>
    %113 = arith.addf %105, %112 : vector<32x32xf32>
    %c0_103 = arith.constant 0 : index
    %c0_104 = arith.constant 0 : index
    %c8_105 = arith.constant 8 : index
    %114 = vector.load %arg9[%c0_103, %c0_104, %c8_105] : memref<2x32x24xbf16, #tpu.memory_space<vmem>>, vector<1x32x16xbf16>
    %115 = vector.shape_cast %114 : vector<1x32x16xbf16> to vector<32x16xbf16>
    %c1_106 = arith.constant 1 : index
    %c0_107 = arith.constant 0 : index
    %c8_108 = arith.constant 8 : index
    %116 = vector.load %arg9[%c1_106, %c0_107, %c8_108] : memref<2x32x24xbf16, #tpu.memory_space<vmem>>, vector<1x32x16xbf16>
    %117 = vector.shape_cast %116 : vector<1x32x16xbf16> to vector<32x16xbf16>
    %118 = tpu.concatenate %115, %117 in 1 : vector<32x16xbf16>, vector<32x16xbf16> -> vector<32x32xbf16>
    %c0_109 = arith.constant 0 : index
    %c64_110 = arith.constant 64 : index
    %119 = vector.load %arg6[%c0_109, %c64_110] : memref<32x96xbf16, #tpu.memory_space<vmem>>, vector<32x32xbf16>
    %cst_111 = arith.constant dense<0.000000e+00> : vector<32x32xf32>
    %120 = tpu.matmul %119, %118, %cst_111 {dimension_numbers = #tpu.dot_dimension_numbers<[1], [0], [0], [1], [0, 0, 1, 1], [], []>} : vector<32x32xbf16>, vector<32x32xbf16>, vector<32x32xf32> -> vector<32x32xf32>
    %121 = arith.addf %113, %120 : vector<32x32xf32>
    %c0_112 = arith.constant 0 : index
    %c0_113 = arith.constant 0 : index
    %122 = vector.load %arg7[%c0_112, %c0_113] : memref<32x1xf32, #tpu.memory_space<vmem>>, vector<32x1xf32>
    %123 = vector.broadcast %122 : vector<32x1xf32> to vector<32x32xf32>
    %124 = arith.addf %121, %123 : vector<32x32xf32>
    %cst_114 = arith.constant 0.000000e+00 : f32
    %125 = vector.broadcast %cst_114 : f32 to vector<32x32xf32>
    %126 = arith.maximumf %124, %125 : vector<32x32xf32>
    %127 = arith.addf %126, %52 : vector<32x32xf32>
    %c0_115 = arith.constant 0 : index
    %c0_116 = arith.constant 0 : index
    %128 = vector.load %arg8[%c0_115, %c0_116] : memref<32x32xf32, #tpu.memory_space<vmem>>, vector<32x32xf32>
    tpu.vector_store %arg8[%c0_115, %c0_116], %127 {strides = array<i32>} : memref<32x32xf32, #tpu.memory_space<vmem>>, vector<32x32xf32>,
    return
  }
  func.func @transform_0(%arg0: i32) -> (i32, i32, i32) {
    %c0_i32 = arith.constant 0 : i32
    %c0_i32_0 = arith.constant 0 : i32
    %c0_i32_1 = arith.constant 0 : i32
    return %arg0, %c0_i32, %c0_i32_0 : i32, i32, i32
  }
  func.func @transform_1(%arg0: i32) -> (i32, i32) {
    %c0_i32 = arith.constant 0 : i32
    %c0_i32_0 = arith.constant 0 : i32
    %c0_i32_1 = arith.constant 0 : i32
    return %c0_i32, %c0_i32_0 : i32, i32
  }
  func.func @transform_2(%arg0: i32) -> (i32, i32) {
    %c0_i32 = arith.constant 0 : i32
    %c0_i32_0 = arith.constant 0 : i32
    %c0_i32_1 = arith.constant 0 : i32
    return %c0_i32, %c0_i32_0 : i32, i32
  }
  func.func @transform_3(%arg0: i32) -> (i32, i32) {
    %c0_i32 = arith.constant 0 : i32
    %c0_i32_0 = arith.constant 0 : i32
    %c0_i32_1 = arith.constant 0 : i32
    return %c0_i32, %c0_i32_0 : i32, i32
  }
  func.func @transform_4(%arg0: i32) -> (i32, i32) {
    %c0_i32 = arith.constant 0 : i32
    %c0_i32_0 = arith.constant 0 : i32
    %c0_i32_1 = arith.constant 0 : i32
    return %c0_i32, %c0_i32_0 : i32, i32
  }
  func.func @transform_5(%arg0: i32) -> (i32, i32) {
    %c0_i32 = arith.constant 0 : i32
    %c0_i32_0 = arith.constant 0 : i32
    %c0_i32_1 = arith.constant 0 : i32
    return %c0_i32, %c0_i32_0 : i32, i32
  }
  func.func @transform_6(%arg0: i32) -> (i32, i32) {
    %c0_i32 = arith.constant 0 : i32
    %c0_i32_0 = arith.constant 0 : i32
    %c0_i32_1 = arith.constant 0 : i32
    return %c0_i32, %c0_i32_0 : i32, i32
  }
  func.func @transform_7(%arg0: i32) -> (i32, i32) {
    %c0_i32 = arith.constant 0 : i32
    %c0_i32_0 = arith.constant 0 : i32
    return %c0_i32, %arg0 : i32, i32
  }
}

</mosaic_0001>

<bundles_post_ra>
// kernel: temporal_conv_net_forward.1
= control target key start
LH: loop header
LB: loop body
LE: loop exit
PB: predicated region body
PF: predicated region fallthrough
CT: control target
= control target key end

     0   :  { %vm27_vm0 = vcmask 27648   ;;  %vm32_vm1 = vcmask 191648   ;;  %v1216_v2 = vmov 0   ;;  %s1217_s29 = smov 4   ;;  %s1218_s30 = smov 124   ;;  %vm54_vm2 = vcmask 156704   ;;  %s1485_s0 = inlined_call_operand.vmem [shape: f32[2,4,16], index: 0, kind: input, shape index: {}]   ;;  %s1486_s1 = inlined_call_operand.vmem [shape: bf16[32,12], index: 1, kind: input, shape index: {}]   ;;  %s1487_s2 = inlined_call_operand.vmem [shape: f32[32,1], index: 2, kind: input, shape index: {}]   ;;  %s1488_s3 = inlined_call_operand.vmem [shape: bf16[32,96], index: 3, kind: input, shape index: {}]   ;;  %s1489_s4 = inlined_call_operand.vmem [shape: f32[32,1], index: 4, kind: input, shape index: {}]   ;;  %s1490_s5 = inlined_call_operand.vmem [shape: bf16[32,96], index: 5, kind: input, shape index: {}]   ;;  %s1491_s6 = inlined_call_operand.vmem [shape: f32[32,1], index: 6, kind: input, shape index: {}]   ;;  %s1492_s7 = inlined_call_operand.vmem [shape: f32[32,32], index: 7, kind: output, shape index: {}]  }
   0x1   :  { %v46_v0 = vld [vmem:[%s1485_s0] sm:$0xf]  ;;  %v1024_v1 = vld [vmem:[%s1485_s0 + $0x4] sm:$0xf]  ;;  %28 = vst.msk [vmem:[#allocation2] sm:$0xf] %vm27_vm0, %v1216_v2  ;;  %1199 = vset.pattern.permute.xlu1 %v1216_v2  ;;  %1198 = vset.pattern.permute.xlu0 %v1216_v2 }
   0x2   :  { %29 = vst.msk [vmem:[#allocation2 + $0x4] sm:$0xf] %vm27_vm0, %v1216_v2  ;;  %30 = vst.msk [vmem:[#allocation2 + $0x8] sm:$0xf] %vm27_vm0, %v1216_v2  ;;  %v1068_v3 = vpack.c.bf16 %v46_v0, %v46_v0  ;;  %v1291_v4 = vld [vmem:[%s1486_s1 + $0x8] sm:$0xff]   ;;  %v1069_v5 = vpack.c.bf16 %v1024_v1, %v1024_v1  ;;  %v1201_v6 = vld [vmem:[%s1486_s1] sm:$0xff]  }
   0x3   :  { %31 = vst.msk [vmem:[#allocation2 + $0xc] sm:$0xf] %vm27_vm0, %v1216_v2  ;;  %38 = vst.msk [vmem:[#allocation2 + $0x10] sm:$0xf] %vm27_vm0, %v1216_v2  ;;  %105 = vrot.lane.b32.xlu1 %v1291_v4, %s1218_s30  ;;  %vm107_vm3 = vcmask 31744   ;;  %s1219_s10 = smov 125  }
   0x4   :  { %39 = vst.msk [vmem:[#allocation2 + $0x14] sm:$0xf] %vm27_vm0, %v1216_v2  ;;  %40 = vst.msk [vmem:[#allocation2 + $0x18] sm:$0xf] %vm27_vm0, %v1216_v2  ;;  %51 = vrot.lane.b32.xlu0 %v1068_v3, %s1217_s29  ;;  %1119 = vmatprep.mubr.msk.bf16.mxu1 %vm107_vm3, %v1201_v6  ;;  %s1220_s1 = smov 123   ;;  %s1221_s11 = smov 12  }
   0x5   :  { %41 = vst.msk [vmem:[#allocation2 + $0x1c] sm:$0xf] %vm27_vm0, %v1216_v2  ;;  %s1222_s12 = smov 13   ;;  %s1223_s13 = smov 120   ;;  %v297_v12 = vld [vmem:[%s1487_s2 + $0x10] sm:$0xff]  ;;  %v296_v13 = vld [vmem:[%s1487_s2 + $0x8] sm:$0xff] }
   0x6   :  { %33 = vst.msk [vmem:[#allocation2] sm:$0xf] %vm32_vm1, %v1216_v2  ;;  %42 = vst.msk [vmem:[#allocation2 + $0x10] sm:$0xf] %vm32_vm1, %v1216_v2  ;;  %s1224_s16 = smov 11   ;;  %v298_v14 = vld [vmem:[%s1487_s2 + $0x18] sm:$0xff] }
   0x7   :  { %34 = vst.msk [vmem:[#allocation2 + $0x4] sm:$0xf] %vm32_vm1, %v1216_v2  ;;  %35 = vst.msk [vmem:[#allocation2 + $0x8] sm:$0xf] %vm32_vm1, %v1216_v2  ;;  %v295_v15 = vld [vmem:[%s1487_s2] sm:$0xff]  ;;  %vm78_vm4 = vcmask 130048  }
   0x8   :  { %36 = vst.msk [vmem:[#allocation2 + $0xc] sm:$0xf] %vm32_vm1, %v1216_v2  ;;  %43 = vst.msk [vmem:[#allocation2 + $0x14] sm:$0xf] %vm32_vm1, %v1216_v2  ;;  %62 = vrot.lane.b32.xlu0 %v1069_v5, %s1217_s29  ;;  %vm114_vm5 = vcmask 1041408   ;;  %s1225_s2 = smov 116  }
   0x9   :  { %44 = vst.msk [vmem:[#allocation2 + $0x18] sm:$0xf] %vm32_vm1, %v1216_v2  ;;  %45 = vst.msk [vmem:[#allocation2 + $0x1c] sm:$0xf] %vm32_vm1, %v1216_v2  ;;  %v1204_v3 = vld [vmem:[%s1488_s3] sm:$0xff]   ;;  %s1226_s25 = smov 96  }
   0xa   :  { %vm351_vm6 = vcmask 158752   ;;  %vm450_vm7 = vcmask 261120   ;;  %s1228_s0 = smov 10   ;;  %s1229_s28 = smov 14  }
   0xb   :  { %s1230_s8 = smov 122   ;;  %s1231_s9 = smov 64  }
   0xc   :  { %103 = vrot.lane.b32.xlu0 %v1201_v6, %s1218_s30  ;;  %s1233_s20 = smov 8  }
  0x75   :  { %v106_v16 = vpop.permute.xlu1 %105 }
  0x76   :  { %v52_v7 = vpop.permute.xlu0 %51 }
  0x77   :  { %55 = vst.msk [vmem:[#allocation2] sm:$0x3] %vm54_vm2, %v52_v7 }
  0x7a   :  { %v63_v8 = vpop.permute.xlu0 %62 }
  0x7b   :  { %65 = vst.msk [vmem:[#allocation2 + $0x10] sm:$0x3] %vm54_vm2, %v63_v8 }
  0x7e   :  { %v1202_v9 = vld [vmem:[#allocation2] ss:$0 sps:$4 sm:$0x33]   ;;  %v104_v10 = vpop.permute.xlu0 %103 }
  0x7f   :  { %1113 = vmatprep.mubr.msk.bf16.mxu0 %vm107_vm3, %v104_v10  ;;  %71 = vrot.lane.b32.xlu0 %v1202_v9, %s1219_s10 }
  0x80   :  { %86 = vrot.lane.b32.xlu1 %v1202_v9, %s1218_s30 }
  0x82   :  { %v1203_v11 = vld [vmem:[#allocation2 + $0x10] ss:$0 sps:$4 sm:$0x33]  }
  0x83   :  { %223 = vrot.lane.b32.xlu0 %v1202_v9, %s1220_s1 }
  0x84   :  { %88 = vrot.lane.b32.xlu1 %v1203_v11, %s1221_s11 }
  0x87   :  { %230 = vrot.lane.b32.xlu0 %v1201_v6, %s1223_s13 }
  0x88   :  { %76 = vrot.lane.b32.xlu1 %v1203_v11, %s1222_s12 }
  0x8b   :  { %311 = vperm.xlu0 %1198, %v297_v12  }
  0x8c   :  { %225 = vrot.lane.b32.xlu1 %v1203_v11, %s1224_s16 }
  0x8f   :  { %306 = vperm.xlu0 %1198, %v296_v13  }
  0x90   :  { %232 = vrot.lane.b32.xlu1 %v1291_v4, %s1223_s13 }
  0x94   :  { %316 = vperm.xlu1 %1199, %v298_v14  }
  0x98   :  { %301 = vperm.xlu1 %1199, %v295_v15  }
  0xf1   :  { %v72_v18 = vpop.permute.xlu0 %71 }
  0xf2   :  { %v87_v17 = vpop.permute.xlu1 %86 }
  0xf5   :  { %v224_v20 = vpop.permute.xlu0 %223 }
  0xf6   :  { %v89_v19 = vpop.permute.xlu1 %88 }
  0xf7   :  { %v92_v21 = vsel %vm78_vm4, %v87_v17, %v89_v19  ;;  %v640_v19 = vld [vmem:[%s1489_s4] sm:$0xff] }
  0xf8   :  { %1177 = vmatprep.subr.msk.bf16.mxu0 %vm114_vm5, %v92_v21  ;;  %v115_v22 = vsel %vm114_vm5, %v92_v21, 0  ;;  %v641_v21 = vld [vmem:[%s1489_s4 + $0x8] sm:$0xff] }
  0xf9   :  { %1112 = vmatpush3.bf16.msra.mxu0 %v115_v22  ;;  %v231_v24 = vpop.permute.xlu0 %230 }
  0xfa   :  { %v77_v23 = vpop.permute.xlu1 %76 }
  0xfb   :  { %v81_v25 = vsel %vm78_vm4, %v72_v18, %v77_v23  ;;  %v642_v18 = vld [vmem:[%s1489_s4 + $0x10] sm:$0xff] }
  0xfc   :  { %1114 = vmatmul.mubr.msk.bf16.vlgmr.msra.gmra.mxu0 %vm107_vm3, %v106_v16  ;;  %1178 = vmatprep.subr.msk.bf16.mxu1 %vm114_vm5, %v81_v25  ;;  %v172_v26 = vsel %vm114_vm5, %v81_v25, 0 }
  0xfd   :  { %1118 = vmatpush3.bf16.msra.mxu1 %v172_v26  ;;  %1125 = vmatprep.mubr.msk.bf16.mxu0 %vm107_vm3, %v231_v24 }
  0xfe   :  { %v226_v27 = vpop.permute.xlu1 %225 }
  0xff   :  { %v229_v28 = vsel %vm78_vm4, %v224_v20, %v226_v27  ;;  %v643_v20 = vld [vmem:[%s1489_s4 + $0x18] sm:$0xff] }
 0x100   :  { %v240_v29 = vsel %vm114_vm5, %v229_v28, 0  ;;  %1120 = vmatmul.mubr.msk.bf16.vlgmr.msra.gmra.mxu1 %vm107_vm3, %v1291_v4  ;;  %1179 = vmatprep.subr.msk.bf16.mxu0 %vm114_vm5, %v229_v28  ;;  %v1365_v4 = vld [vmem:[%s1488_s3 + $0x8] sm:$0xff]   ;;  %s1227_s3 = smov 126  }
 0x101   :  { %1124 = vmatpush3.bf16.msra.mxu0 %v240_v29 }
 0x102   :  { %v233_v30 = vpop.permute.xlu1 %232 }
 0x104   :  { %1126 = vmatmul.mubr.msk.bf16.vlgmr.msra.gmra.mxu0 %vm107_vm3, %v233_v30 }
 0x105   :  { %1141 = vmatprep.mubr.msk.bf16.mxu0 %vm450_vm7, %v1204_v3 }
 0x106   :  { %v312_v39 = vpop.permute.xlu0 %311 }
 0x10a   :  { %v307_v60 = vpop.permute.xlu0 %306 }
 0x10f   :  { %v317_v35 = vpop.permute.xlu1 %316 }
 0x113   :  { %v302_v49 = vpop.permute.xlu1 %301 }
 0x1bc   :  { %v1115_v31 = vpop.f32.mrf.mxu0 }
 0x1be   :  { %v151_v32 = vpop.f32.mrf.mxu0 }
 0x1c0   :  { %v1116_v33 = vpop.f32.mrf.mxu0  ;;  %v1121_v34 = vpop.f32.mrf.mxu1 }
 0x1c1   :  { %v217_v38 = vadd.f32 %v1121_v34, %v1115_v31 }
 0x1c2   :  { %v154_v36 = vpop.f32.mrf.mxu0  ;;  %v208_v37 = vpop.f32.mrf.mxu1 }
 0x1c3   :  { %v209_v42 = vadd.f32 %v208_v37, %v151_v32 }
 0x1c4   :  { %v1122_v40 = vpop.f32.mrf.mxu1  ;;  %v1127_v41 = vpop.f32.mrf.mxu0 }
 0x1c5   :  { %v293_v43 = vadd.f32 %v1127_v41, %v217_v38  ;;  %v220_v46 = vadd.f32 %v1122_v40, %v1116_v33 }
 0x1c6   :  { %v211_v44 = vpop.f32.mrf.mxu1  ;;  %v276_v45 = vpop.f32.mrf.mxu0 }
 0x1c7   :  { %v291_v47 = vadd.f32 %v276_v45, %v209_v42  ;;  %v321_v48 = vadd.f32 %v312_v39, %v293_v43  ;;  %v212_v51 = vadd.f32 %v211_v44, %v154_v36 }
 0x1c8   :  { %v1128_v50 = vpop.f32.mrf.mxu0 }
 0x1c9   :  { %v1334_v52 = vmax.f32 %v321_v48, 0.0  ;;  %v294_v53 = vadd.f32 %v1128_v50, %v220_v46  ;;  %v319_v56 = vadd.f32 %v302_v49, %v291_v47 }
 0x1ca   :  { %v279_v54 = vpop.f32.mrf.mxu0 }
 0x1cb   :  { %v1072_v55 = vpack.c.bf16 %v1334_v52, %v1334_v52  ;;  %v322_v57 = vadd.f32 %v317_v35, %v294_v53  ;;  %v292_v58 = vadd.f32 %v279_v54, %v212_v51  ;;  %v1341_v61 = vmax.f32 %v319_v56, 0.0 }
 0x1cd   :  { %v1338_v59 = vmax.f32 %v322_v57, 0.0  ;;  %343 = vrot.lane.b32.xlu1 %v1072_v55, %s1217_s29  ;;  %v320_v62 = vadd.f32 %v307_v60, %v292_v58  ;;  %v1070_v0 = vpack.c.bf16 %v1341_v61, %v1341_v61 }
 0x1cf   :  { %v1073_v63 = vpack.c.bf16 %v1338_v59, %v1338_v59  ;;  %v1349_v1 = vmax.f32 %v320_v62, 0.0 }
 0x1d1   :  { %345 = vrot.lane.b32.xlu0 %v1073_v63, %s1217_s29  ;;  %360 = vrot.lane.b32.xlu1 %v1072_v55, %s1225_s2  ;;  %v1071_v2 = vpack.c.bf16 %v1349_v1, %v1349_v1 }
 0x1d5   :  { %362 = vrot.lane.b32.xlu0 %v1073_v63, %s1225_s2  ;;  %339 = vrot.lane.b32.xlu1 %v1070_v0, %s1217_s29 }
 0x1d9   :  { %356 = vrot.lane.b32.xlu1 %v1070_v0, %s1225_s2  ;;  %341 = vrot.lane.b32.xlu0 %v1071_v2, %s1217_s29 }
 0x1dd   :  { %358 = vrot.lane.b32.xlu0 %v1071_v2, %s1225_s2  ;;  %446 = vrot.lane.b32.xlu1 %v1204_v3, %s1226_s25 }
 0x1e1   :  { %448 = vrot.lane.b32.xlu0 %v1365_v4, %s1226_s25 }
 0x23f   :  { %v344_v5 = vpop.permute.xlu1 %343 }
 0x240   :  { %354 = vst.msk [vmem:[#allocation2 + $0x8] sm:$0xf] %vm351_vm6, %v344_v5 }
 0x243   :  { %v361_v6 = vpop.permute.xlu1 %360  ;;  %v346_v7 = vpop.permute.xlu0 %345 }
 0x244   :  { %370 = vst.msk [vmem:[#allocation2 + $0x18] sm:$0xf] %vm351_vm6, %v361_v6  ;;  %355 = vst.msk [vmem:[#allocation2 + $0xc] sm:$0xf] %vm351_vm6, %v346_v7 }
 0x247   :  { %v340_v8 = vpop.permute.xlu1 %339  ;;  %v363_v9 = vpop.permute.xlu0 %362 }
 0x248   :  { %352 = vst.msk [vmem:[#allocation2] sm:$0xf] %vm351_vm6, %v340_v8  ;;  %371 = vst.msk [vmem:[#allocation2 + $0x1c] sm:$0xf] %vm351_vm6, %v363_v9 }
 0x24b   :  { %v357_v10 = vpop.permute.xlu1 %356  ;;  %v342_v11 = vpop.permute.xlu0 %341  ;;  %v1206_v12 = vld [vmem:[#allocation2 + $0x8] sm:$0xff]  }
 0x24c   :  { %368 = vst.msk [vmem:[#allocation2 + $0x10] sm:$0xf] %vm351_vm6, %v357_v10  ;;  %353 = vst.msk [vmem:[#allocation2 + $0x4] sm:$0xf] %vm351_vm6, %v342_v11  ;;  %422 = vrot.lane.b32.xlu1 %v1206_v12, %s1218_s30  ;;  %v1210_v11 = vld [vmem:[%s1490_s5] sm:$0xff]  }
 0x24f   :  { %v359_v13 = vpop.permute.xlu0 %358  ;;  %v1207_v14 = vld [vmem:[#allocation2 + $0x18] sm:$0xff]   ;;  %v447_v15 = vpop.permute.xlu1 %446 }
 0x250   :  { %369 = vst.msk [vmem:[#allocation2 + $0x14] sm:$0xf] %vm351_vm6, %v359_v13  ;;  %1133 = vmatprep.mubr.msk.bf16.mxu1 %vm450_vm7, %v447_v15  ;;  %392 = vrot.lane.b32.xlu1 %v1206_v12, %s1227_s3 }
 0x251   :  { %426 = vrot.lane.b32.xlu0 %v1207_v14, %s1221_s11 }
 0x253   :  { %v1208_v16 = vld [vmem:[#allocation2] sm:$0xff]   ;;  %v449_v22 = vpop.permute.xlu0 %448 }
 0x254   :  { %567 = vrot.lane.b32.xlu1 %v1207_v14, %s1228_s0 }
 0x255   :  { %406 = vrot.lane.b32.xlu0 %v1207_v14, %s1229_s28 }
 0x257   :  { %v1209_v17 = vld [vmem:[#allocation2 + $0x10] sm:$0xff]  }
 0x258   :  { %420 = vrot.lane.b32.xlu1 %v1208_v16, %s1218_s30 }
 0x259   :  { %563 = vrot.lane.b32.xlu0 %v1206_v12, %s1230_s8 }
 0x25c   :  { %390 = vrot.lane.b32.xlu1 %v1208_v16, %s1227_s3 }
 0x25d   :  { %424 = vrot.lane.b32.xlu0 %v1209_v17, %s1221_s11 }
 0x260   :  { %561 = vrot.lane.b32.xlu1 %v1208_v16, %s1230_s8 }
 0x261   :  { %404 = vrot.lane.b32.xlu0 %v1209_v17, %s1229_s28 }
 0x264   :  { %577 = vrot.lane.b32.xlu1 %v1204_v3, %s1231_s9 }
 0x265   :  { %565 = vrot.lane.b32.xlu0 %v1209_v17, %s1228_s0 }
 0x268   :  { %656 = vperm.xlu1 %1199, %v642_v18  }
 0x269   :  { %579 = vrot.lane.b32.xlu0 %v1365_v4, %s1231_s9 }
 0x26c   :  { %646 = vperm.xlu1 %1199, %v640_v19  }
 0x26d   :  { %661 = vperm.xlu0 %1198, %v643_v20  }
 0x271   :  { %651 = vperm.xlu0 %1198, %v641_v21  }
 0x2be   :  { %v423_v23 = vpop.permute.xlu1 %422 }
 0x2c2   :  { %v393_v24 = vpop.permute.xlu1 %392 }
 0x2c3   :  { %v427_v25 = vpop.permute.xlu0 %426 }
 0x2c4   :  { %v434_v26 = vsel %vm78_vm4, %v423_v23, %v427_v25 }
 0x2c5   :  { %1129 = vmatprep.subr.bf16.mxu1 %v434_v26 }
 0x2c6   :  { %1130 = vmatpush3.bf16.msra.mxu1 %v434_v26  ;;  %v568_v27 = vpop.permute.xlu1 %567 }
 0x2c7   :  { %v407_v28 = vpop.permute.xlu0 %406 }
 0x2c8   :  { %v414_v29 = vsel %vm78_vm4, %v393_v24, %v407_v28 }
 0x2c9   :  { %1137 = vmatprep.subr.bf16.mxu0 %v414_v29 }
 0x2ca   :  { %1138 = vmatpush3.bf16.msra.mxu0 %v414_v29  ;;  %v421_v30 = vpop.permute.xlu1 %420 }
 0x2cb   :  { %v564_v31 = vpop.permute.xlu0 %563 }
 0x2cc   :  { %v575_v35 = vsel %vm78_vm4, %v564_v31, %v568_v27 }
 0x2ce   :  { %v391_v32 = vpop.permute.xlu1 %390 }
 0x2cf   :  { %v425_v33 = vpop.permute.xlu0 %424 }
 0x2d0   :  { %v430_v34 = vsel %vm78_vm4, %v421_v30, %v425_v33  ;;  %v1215_v33 = vld [vmem:[%s1490_s5 + $0x8] sm:$0xff]  }
 0x2d1   :  { %1131 = vmatprep.subr.bf16.mxu1 %v430_v34 }
 0x2d2   :  { %1132 = vmatpush3.bf16.msra.mxu1 %v430_v34  ;;  %v562_v36 = vpop.permute.xlu1 %561  ;;  %v979_v34 = vld [vmem:[%s1491_s6] sm:$0xff] }
 0x2d3   :  { %1145 = vmatprep.subr.bf16.mxu1 %v575_v35  ;;  %v405_v37 = vpop.permute.xlu0 %404 }
 0x2d4   :  { %v410_v38 = vsel %vm78_vm4, %v391_v32, %v405_v37  ;;  %v982_v37 = vld [vmem:[%s1491_s6 + $0x18] sm:$0xff] }
 0x2d5   :  { %1134 = vmatmul.mubr.msk.bf16.vlgmr.msra.gmra.mxu1 %vm450_vm7, %v449_v22  ;;  %1139 = vmatprep.subr.bf16.mxu0 %v410_v38 }
 0x2d6   :  { %1140 = vmatpush3.bf16.msra.mxu0 %v410_v38  ;;  %1146 = vmatpush3.bf16.msra.mxu1 %v575_v35  ;;  %v578_v40 = vpop.permute.xlu1 %577  ;;  %v980_v35 = vld [vmem:[%s1491_s6 + $0x8] sm:$0xff] }
 0x2d7   :  { %v566_v39 = vpop.permute.xlu0 %565  ;;  %1149 = vmatprep.mubr.msk.bf16.mxu1 %vm450_vm7, %v578_v40 }
 0x2d8   :  { %v571_v41 = vsel %vm78_vm4, %v562_v36, %v566_v39  ;;  %v981_v36 = vld [vmem:[%s1491_s6 + $0x10] sm:$0xff] }
 0x2d9   :  { %1142 = vmatmul.mubr.msk.bf16.vlgmr.msra.gmra.mxu0 %vm450_vm7, %v1365_v4  ;;  %1147 = vmatprep.subr.bf16.mxu1 %v571_v41 }
 0x2da   :  { %1148 = vmatpush3.bf16.msra.mxu1 %v571_v41 }
 0x2db   :  { %v580_v42 = vpop.permute.xlu0 %579 }
 0x2dd   :  { %1150 = vmatmul.mubr.msk.bf16.vlgmr.msra.gmra.mxu1 %vm450_vm7, %v580_v42 }
 0x2de   :  { %1165 = vmatprep.mubr.msk.bf16.mxu1 %vm450_vm7, %v1210_v11 }
 0x2e3   :  { %v657_v49 = vpop.permute.xlu1 %656 }
 0x2e7   :  { %v647_v5 = vpop.permute.xlu1 %646 }
 0x2e8   :  { %v662_v63 = vpop.permute.xlu0 %661 }
 0x2ec   :  { %v652_v13 = vpop.permute.xlu0 %651 }
 0x395   :  { %v1135_v43 = vpop.f32.mrf.mxu1 }
 0x397   :  { %v491_v44 = vpop.f32.mrf.mxu1 }
 0x399   :  { %v1136_v45 = vpop.f32.mrf.mxu1  ;;  %v1143_v46 = vpop.f32.mrf.mxu0 }
 0x39a   :  { %v555_v50 = vadd.f32 %v1143_v46, %v1135_v43 }
 0x39b   :  { %v494_v47 = vpop.f32.mrf.mxu1  ;;  %v546_v48 = vpop.f32.mrf.mxu0 }
 0x39c   :  { %v547_v54 = vadd.f32 %v546_v48, %v491_v44 }
 0x39d   :  { %v1144_v51 = vpop.f32.mrf.mxu0  ;;  %v1151_v53 = vpop.f32.mrf.mxu1 }
 0x39e   :  { %v638_v55 = vadd.f32 %v1151_v53, %v555_v50  ;;  %v558_v58 = vadd.f32 %v1144_v51, %v1136_v45 }
 0x39f   :  { %v549_v56 = vpop.f32.mrf.mxu0  ;;  %v621_v57 = vpop.f32.mrf.mxu1 }
 0x3a0   :  { %v666_v60 = vadd.f32 %v657_v49, %v638_v55  ;;  %v636_v62 = vadd.f32 %v621_v57, %v547_v54  ;;  %v550_v3 = vadd.f32 %v549_v56, %v494_v47 }
 0x3a1   :  { %v1152_v0 = vpop.f32.mrf.mxu1 }
 0x3a2   :  { %v670_v2 = vmax.f32 %v666_v60, 0.0  ;;  %v639_v4 = vadd.f32 %v1152_v0, %v558_v58  ;;  %v664_v8 = vadd.f32 %v647_v5, %v636_v62 }
 0x3a3   :  { %v624_v6 = vpop.f32.mrf.mxu1 }
 0x3a4   :  { %v1076_v7 = vpack.c.bf16 %v670_v2, %v670_v2  ;;  %v667_v9 = vadd.f32 %v662_v63, %v639_v4  ;;  %v637_v10 = vadd.f32 %v624_v6, %v550_v3  ;;  %v668_v14 = vmax.f32 %v664_v8, 0.0 }
 0x3a6   :  { %v671_v12 = vmax.f32 %v667_v9, 0.0  ;;  %688 = vrot.lane.b32.xlu1 %v1076_v7, %s1217_s29  ;;  %v665_v16 = vadd.f32 %v652_v13, %v637_v10  ;;  %v1074_v17 = vpack.c.bf16 %v668_v14, %v668_v14 }
 0x3a8   :  { %v1077_v15 = vpack.c.bf16 %v671_v12, %v671_v12  ;;  %v669_v18 = vmax.f32 %v665_v16, 0.0 }
 0x3aa   :  { %704 = vrot.lane.b32.xlu1 %v1076_v7, %s1225_s2  ;;  %690 = vrot.lane.b32.xlu0 %v1077_v15, %s1217_s29  ;;  %v1075_v19 = vpack.c.bf16 %v669_v18, %v669_v18 }
 0x3ae   :  { %684 = vrot.lane.b32.xlu1 %v1074_v17, %s1217_s29  ;;  %706 = vrot.lane.b32.xlu0 %v1077_v15, %s1225_s2 }
 0x3b2   :  { %700 = vrot.lane.b32.xlu1 %v1074_v17, %s1225_s2  ;;  %686 = vrot.lane.b32.xlu0 %v1075_v19, %s1217_s29  ;;  %s1232_s29 = smov 16  }
 0x3b6   :  { %702 = vrot.lane.b32.xlu0 %v1075_v19, %s1225_s2 }
 0x3ba   :  { %786 = vrot.lane.b32.xlu0 %v1210_v11, %s1226_s25 }
 0x418   :  { %v689_v20 = vpop.permute.xlu1 %688 }
 0x419   :  { %698 = vst.msk [vmem:[#allocation2 + $0x8] sm:$0xf] %vm351_vm6, %v689_v20 }
 0x41c   :  { %v705_v21 = vpop.permute.xlu1 %704  ;;  %v691_v22 = vpop.permute.xlu0 %690 }
 0x41d   :  { %714 = vst.msk [vmem:[#allocation2 + $0x18] sm:$0xf] %vm351_vm6, %v705_v21  ;;  %699 = vst.msk [vmem:[#allocation2 + $0xc] sm:$0xf] %vm351_vm6, %v691_v22 }
 0x420   :  { %v685_v23 = vpop.permute.xlu1 %684  ;;  %v707_v24 = vpop.permute.xlu0 %706 }
 0x421   :  { %696 = vst.msk [vmem:[#allocation2] sm:$0xf] %vm351_vm6, %v685_v23  ;;  %715 = vst.msk [vmem:[#allocation2 + $0x1c] sm:$0xf] %vm351_vm6, %v707_v24 }
 0x424   :  { %v701_v25 = vpop.permute.xlu1 %700  ;;  %v687_v26 = vpop.permute.xlu0 %686  ;;  %v1211_v27 = vld [vmem:[#allocation2 + $0x8] sm:$0xff]  }
 0x425   :  { %712 = vst.msk [vmem:[#allocation2 + $0x10] sm:$0xf] %vm351_vm6, %v701_v25  ;;  %697 = vst.msk [vmem:[#allocation2 + $0x4] sm:$0xf] %vm351_vm6, %v687_v26  ;;  %762 = vrot.lane.b32.xlu1 %v1211_v27, %s1218_s30 }
 0x428   :  { %v703_v28 = vpop.permute.xlu0 %702  ;;  %v1212_v29 = vld [vmem:[#allocation2 + $0x18] sm:$0xff]  }
 0x429   :  { %713 = vst.msk [vmem:[#allocation2 + $0x14] sm:$0xf] %vm351_vm6, %v703_v28  ;;  %746 = vrot.lane.b32.xlu1 %v1212_v29, %s1232_s29  ;;  %766 = vrot.lane.b32.xlu0 %v1212_v29, %s1221_s11 }
 0x42c   :  { %v787_v30 = vpop.permute.xlu0 %786  ;;  %v1213_v31 = vld [vmem:[#allocation2] sm:$0xff]  }
 0x42d   :  { %1157 = vmatprep.mubr.msk.bf16.mxu0 %vm450_vm7, %v787_v30  ;;  %902 = vrot.lane.b32.xlu1 %v1211_v27, %s1223_s13 }
 0x42e   :  { %906 = vrot.lane.b32.xlu0 %v1212_v29, %s1233_s20 }
 0x430   :  { %v1214_v32 = vld [vmem:[#allocation2 + $0x10] sm:$0xff]  }
 0x431   :  { %760 = vrot.lane.b32.xlu1 %v1213_v31, %s1218_s30 }
 0x432   :  { %764 = vrot.lane.b32.xlu0 %v1214_v32, %s1221_s11 }
 0x435   :  { %788 = vrot.lane.b32.xlu1 %v1215_v33, %s1226_s25 }
 0x436   :  { %744 = vrot.lane.b32.xlu0 %v1214_v32, %s1232_s29 }
 0x439   :  { %900 = vrot.lane.b32.xlu1 %v1213_v31, %s1223_s13 }
 0x43a   :  { %904 = vrot.lane.b32.xlu0 %v1214_v32, %s1233_s20 }
 0x43d   :  { %916 = vrot.lane.b32.xlu1 %v1210_v11, %s1231_s9 }
 0x43e   :  { %918 = vrot.lane.b32.xlu0 %v1215_v33, %s1231_s9 }
 0x441   :  { %985 = vperm.xlu1 %1199, %v979_v34  }
 0x442   :  { %990 = vperm.xlu0 %1198, %v980_v35  }
 0x445   :  { %995 = vperm.xlu1 %1199, %v981_v36  }
 0x446   :  { %1000 = vperm.xlu0 %1198, %v982_v37  }
 0x497   :  { %v763_v38 = vpop.permute.xlu1 %762 }
 0x49b   :  { %v747_v39 = vpop.permute.xlu1 %746  ;;  %v767_v40 = vpop.permute.xlu0 %766 }
 0x49c   :  { %v774_v41 = vsel %vm78_vm4, %v763_v38, %v767_v40  ;;  %v754_v42 = vsel %vm78_vm4, %v1211_v27, %v747_v39 }
 0x49d   :  { %1153 = vmatprep.subr.bf16.mxu0 %v774_v41  ;;  %1161 = vmatprep.subr.bf16.mxu1 %v754_v42 }
 0x49e   :  { %1154 = vmatpush3.bf16.msra.mxu0 %v774_v41  ;;  %1162 = vmatpush3.bf16.msra.mxu1 %v754_v42 }
 0x49f   :  { %v903_v43 = vpop.permute.xlu1 %902 }
 0x4a0   :  { %v907_v44 = vpop.permute.xlu0 %906 }
 0x4a1   :  { %v914_v48 = vsel %vm78_vm4, %v903_v43, %v907_v44 }
 0x4a3   :  { %v761_v45 = vpop.permute.xlu1 %760 }
 0x4a4   :  { %v765_v46 = vpop.permute.xlu0 %764 }
 0x4a5   :  { %v770_v47 = vsel %vm78_vm4, %v761_v45, %v765_v46 }
 0x4a6   :  { %1155 = vmatprep.subr.bf16.mxu0 %v770_v47 }
 0x4a7   :  { %1156 = vmatpush3.bf16.msra.mxu0 %v770_v47  ;;  %v789_v49 = vpop.permute.xlu1 %788 }
 0x4a8   :  { %1169 = vmatprep.subr.bf16.mxu0 %v914_v48  ;;  %v745_v50 = vpop.permute.xlu0 %744 }
 0x4a9   :  { %v750_v51 = vsel %vm78_vm4, %v1213_v31, %v745_v50 }
 0x4aa   :  { %1158 = vmatmul.mubr.msk.bf16.vlgmr.msra.gmra.mxu0 %vm450_vm7, %v789_v49  ;;  %1163 = vmatprep.subr.bf16.mxu1 %v750_v51 }
 0x4ab   :  { %1164 = vmatpush3.bf16.msra.mxu1 %v750_v51  ;;  %1170 = vmatpush3.bf16.msra.mxu0 %v914_v48  ;;  %v901_v53 = vpop.permute.xlu1 %900 }
 0x4ac   :  { %v905_v54 = vpop.permute.xlu0 %904 }
 0x4ad   :  { %v910_v55 = vsel %vm78_vm4, %v901_v53, %v905_v54 }
 0x4ae   :  { %1166 = vmatmul.mubr.msk.bf16.vlgmr.msra.gmra.mxu1 %vm450_vm7, %v1215_v33  ;;  %1171 = vmatprep.subr.bf16.mxu0 %v910_v55 }
 0x4af   :  { %1172 = vmatpush3.bf16.msra.mxu0 %v910_v55  ;;  %v917_v56 = vpop.permute.xlu1 %916 }
 0x4b0   :  { %v919_v57 = vpop.permute.xlu0 %918  ;;  %1173 = vmatprep.mubr.msk.bf16.mxu0 %vm450_vm7, %v917_v56 }
 0x4b2   :  { %1174 = vmatmul.mubr.msk.bf16.vlgmr.msra.gmra.mxu0 %vm450_vm7, %v919_v57 }
 0x4bc   :  { %v986_v62 = vpop.permute.xlu1 %985 }
 0x4bd   :  { %v991_v4 = vpop.permute.xlu0 %990 }
 0x4c0   :  { %v996_v8 = vpop.permute.xlu1 %995 }
 0x4c1   :  { %v1001_v21 = vpop.permute.xlu0 %1000 }
 0x56a   :  { %v1159_v58 = vpop.f32.mrf.mxu0 }
 0x56c   :  { %v830_v60 = vpop.f32.mrf.mxu0 }
 0x56e   :  { %v1160_v63 = vpop.f32.mrf.mxu0  ;;  %v1167_v0 = vpop.f32.mrf.mxu1 }
 0x56f   :  { %v894_v5 = vadd.f32 %v1167_v0, %v1159_v58 }
 0x570   :  { %v833_v2 = vpop.f32.mrf.mxu0  ;;  %v885_v3 = vpop.f32.mrf.mxu1 }
 0x571   :  { %v886_v9 = vadd.f32 %v885_v3, %v830_v60 }
 0x572   :  { %v1168_v6 = vpop.f32.mrf.mxu1  ;;  %v1175_v7 = vpop.f32.mrf.mxu0 }
 0x573   :  { %v977_v10 = vadd.f32 %v1175_v7, %v894_v5  ;;  %v897_v13 = vadd.f32 %v1168_v6, %v1160_v63 }
 0x574   :  { %v888_v11 = vpop.f32.mrf.mxu1  ;;  %v960_v12 = vpop.f32.mrf.mxu0 }
 0x575   :  { %v1005_v14 = vadd.f32 %v996_v8, %v977_v10  ;;  %v975_v15 = vadd.f32 %v960_v12, %v886_v9  ;;  %v889_v18 = vadd.f32 %v888_v11, %v833_v2 }
 0x576   :  { %v1176_v16 = vpop.f32.mrf.mxu0 }
 0x577   :  { %v1009_v17 = vmax.f32 %v1005_v14, 0.0  ;;  %v1003_v19 = vadd.f32 %v986_v62, %v975_v15  ;;  %v978_v20 = vadd.f32 %v1176_v16, %v897_v13 }
 0x578   :  { %v963_v22 = vpop.f32.mrf.mxu0 }
 0x579   :  { %v1013_v23 = vadd.f32 %v1009_v17, %v1334_v52  ;;  %v1007_v24 = vmax.f32 %v1003_v19, 0.0  ;;  %v1006_v25 = vadd.f32 %v1001_v21, %v978_v20  ;;  %v976_v26 = vadd.f32 %v963_v22, %v889_v18 }
 0x57b   :  { %1017 = vst.msk [vmem:[%s1492_s7 + $0x10] sm:$0xff] %vm450_vm7, %v1013_v23  ;;  %v1011_v27 = vadd.f32 %v1007_v24, %v1341_v61  ;;  %v1010_v28 = vmax.f32 %v1006_v25, 0.0  ;;  %v1004_v29 = vadd.f32 %v991_v4, %v976_v26 }
 0x57d   :  { %1015 = vst.msk [vmem:[%s1492_s7] sm:$0xff] %vm450_vm7, %v1011_v27  ;;  %v1014_v30 = vadd.f32 %v1010_v28, %v1338_v59  ;;  %v1008_v52 = vmax.f32 %v1004_v29, 0.0 }
 0x57f   :  { %1018 = vst.msk [vmem:[%s1492_s7 + $0x18] sm:$0xff] %vm450_vm7, %v1014_v30  ;;  %v1012_v31 = vadd.f32 %v1008_v52, %v1349_v1 }
 0x581   :  { %1016 = vst.msk [vmem:[%s1492_s7 + $0x8] sm:$0xff] %vm450_vm7, %v1012_v31 }

</bundles_post_ra>
